<compile_context>
chip_gen: v7x
topology: tpu7x:2x2x1
jax: 0.10.0
libtpu: 0.0.40
codegen_flags: <defaults>
</compile_context>

<pallas_src>
import numpy as np
import jax
import jax.numpy as jnp
from jax.experimental import pallas as pl
from jax.experimental.pallas import tpu as pltpu

EMBED = 32
HIDDEN = 32
VOCAB = 50
SEQ = 8

_VMEM = pl.BlockSpec(memory_space=pltpu.MemorySpace.VMEM)


# ---------------------------------------------------------------------------
# Static tree tables (the tree is a Python structure, fixed at trace time)
# ---------------------------------------------------------------------------
def _build_tree_tables(tree):
    num_levels = len(tree)
    max_nodes = max(len(level) for level in tree)
    npad = max(8, ((max_nodes + 7) // 8) * 8)          # sublane-aligned node axis
    x_tok = np.full((num_levels, npad), SEQ, np.int32)  # SEQ -> zero-embedding row
    level_left, level_right = [], []
    for l, level in enumerate(tree):
        lids = [None] * npad
        rids = [None] * npad
        for n, node in enumerate(level):
            if l == 0:
                x_tok[l, n] = node[0]
            elif len(node) == 1:
                x_tok[l, n] = node[0]
                lids[n] = node[0]
            else:
                lids[n] = node[0]
                rids[n] = node[1]
        level_left.append(lids)
        level_right.append(rids)
    return x_tok, level_left, level_right


# ---------------------------------------------------------------------------
# Fused single-call kernel: whole tree traversal + classifier head
# ---------------------------------------------------------------------------
def _make_kernel(level_left, level_right, npad):
    num_levels = len(level_left)
    H, E = HIDDEN, EMBED

    def gather_rows(mat, ids, width):
        # Static child gather (indices known at trace time). None -> zero row.
        if all(j is None for j in ids):
            return jnp.zeros((npad, width), jnp.float32)
        rows = [jnp.zeros((1, width), jnp.float32) if j is None
                else mat[j:j + 1, :] for j in ids]
        return jnp.concatenate(rows, axis=0)

    def kernel(xs_ref, wf_ref, bf_ref, wlin_ref, blin_ref, out_ref, op_ref):
        # Fused weights/bias stay resident in VMEM for the whole traversal.
        wf = wf_ref[...]          # (E+2H, 5H) gate columns: [i | f_l | f_r | o | u]
        bf = bf_ref[...]          # (1, 5H) pre-summed (bx + bL + bR per gate)

        h = jnp.zeros((npad, H), jnp.float32)
        c = jnp.zeros((npad, H), jnp.float32)

        for l in range(num_levels):               # static unroll over tree levels
            lids, rids = level_left[l], level_right[l]
            hl = gather_rows(h, lids, H)
            cl = gather_rows(c, lids, H)
            hr = gather_rows(h, rids, H)
            cr = gather_rows(c, rids, H)

            # Assemble [X | HL | HR] in a VMEM scratch slab -> one MXU pass.
            op_ref[:, 0:E] = xs_ref[l]
            op_ref[:, E:E + H] = hl
            op_ref[:, E + H:E + 2 * H] = hr
            z = jnp.dot(op_ref[...], wf, preferred_element_type=jnp.float32) + bf

            i   = jax.nn.sigmoid(z[:, 0 * H:1 * H])
            f_l = jax.nn.sigmoid(z[:, 1 * H:2 * H])
            f_r = jax.nn.sigmoid(z[:, 2 * H:3 * H])
            o   = jax.nn.sigmoid(z[:, 3 * H:4 * H])
            u   = jnp.tanh(      z[:, 4 * H:5 * H])

            c = i * u + f_l * cl + f_r * cr
            h = o * jnp.tanh(c)

        # Classifier head fused into the last step: lane reduction instead of a
        # separate (1,H)x(H,1) pallas_call.
        h_root = h[0:1, :]
        logit = jnp.sum(h_root * wlin_ref[...], axis=1, keepdims=True) + blin_ref[...]
        out_ref[...] = jax.nn.sigmoid(logit)

    return kernel


def make_forward(constituency_tree):
    x_tok, level_left, level_right = _build_tree_tables(constituency_tree)
    num_levels, npad = x_tok.shape
    kernel = _make_kernel(level_left, level_right, npad)
    x_tok_c = jnp.asarray(x_tok)

    @jax.jit
    def forward(input_seq, fused):
        emb = fused['embedding'][input_seq]                        # (S, E)
        emb_ext = jnp.concatenate([emb, jnp.zeros((1, EMBED), jnp.float32)], 0)
        xs = emb_ext[x_tok_c]                                      # (L, NPAD, E)
        out = pl.pallas_call(
            kernel,
            out_shape=jax.ShapeDtypeStruct((1, 1), jnp.float32),
            in_specs=[_VMEM] * 5,
            out_specs=_VMEM,
            scratch_shapes=[pltpu.VMEM((npad, EMBED + 2 * HIDDEN), jnp.float32)],
        )(xs, fused['Wf'], fused['bf'], fused['Wlin'], fused['blin'])
        return out.reshape(-1)   # matches torch output shape (1,)

    return forward


# ---------------------------------------------------------------------------
# Parameter construction (deterministic, mimics nn.Linear / nn.Embedding init)
# ---------------------------------------------------------------------------
def _linear(key, in_f, out_f):
    kw, kb = jax.random.split(key)
    bound = 1.0 / float(in_f) ** 0.5
    w = jax.random.uniform(kw, (out_f, in_f), jnp.float32, -bound, bound)
    b = jax.random.uniform(kb, (out_f,), jnp.float32, -bound, bound)
    return w, b


def init_params(key):
    names = ['w_i', 'w_f', 'w_o', 'w_u',
             'u_i_l', 'u_i_r',
             'u_f_ll', 'u_f_lr', 'u_f_rl', 'u_f_rr',
             'u_o_l', 'u_o_r',
             'u_u_l', 'u_u_r',
             'linear']
    keys = jax.random.split(key, len(names) + 1)
    raw = {}
    for i, name in enumerate(names):
        if name.startswith('w_'):
            raw[name] = _linear(keys[i], EMBED, HIDDEN)
        elif name == 'linear':
            raw[name] = _linear(keys[i], HIDDEN, 1)
        else:
            raw[name] = _linear(keys[i], HIDDEN, HIDDEN)
    raw['embedding'] = jax.random.normal(keys[-1], (VOCAB, EMBED), jnp.float32)

    def w(n):  # (in, out)
        return raw[n][0].T

    def b(n):
        return raw[n][1]

    # Single fused weight (E+2H, 5H). Gate columns: [ i | f_l | f_r | o | u ].
    #   X  rows: w_f replicated into both f_l and f_r slots.
    #   HL rows: f_r slot carries u_f_rr (applied to h_left in the reference).
    #   HR rows: f_r slot carries u_f_rl (applied to h_right in the reference).
    top = jnp.concatenate([w('w_i'), w('w_f'), w('w_f'), w('w_o'), w('w_u')], axis=1)
    mid = jnp.concatenate([w('u_i_l'), w('u_f_ll'), w('u_f_rr'),
                           w('u_o_l'), w('u_u_l')], axis=1)
    bot = jnp.concatenate([w('u_i_r'), w('u_f_lr'), w('u_f_rl'),
                           w('u_o_r'), w('u_u_r')], axis=1)
    Wf = jnp.concatenate([top, mid, bot], axis=0)

    bf = jnp.concatenate([
        b('w_i') + b('u_i_l') + b('u_i_r'),
        b('w_f') + b('u_f_ll') + b('u_f_lr'),
        b('w_f') + b('u_f_rl') + b('u_f_rr'),
        b('w_o') + b('u_o_l') + b('u_o_r'),
        b('w_u') + b('u_u_l') + b('u_u_r'),
    ], axis=0)[None, :]                                # (1, 5H)

    fused = {
        'Wf': Wf,                                      # (96, 160)
        'bf': bf,                                      # (1, 160)
        'Wlin': raw['linear'][0],                      # (1, H) row vector
        'blin': raw['linear'][1][None, :],             # (1, 1)
        'embedding': raw['embedding'],                 # (VOCAB, E)
    }
    return raw, fused


# ---------------------------------------------------------------------------
# Pure-JAX reference (mirrors the PyTorch module literally) for verification
# ---------------------------------------------------------------------------
def reference_forward(constituency_tree, input_seq, raw):
    def lin(name, v):
        w, b = raw[name]
        return v @ w.T + b

    emb = raw['embedding'][jnp.asarray(input_seq, jnp.int32)]
    zeros_h = jnp.zeros((HIDDEN,), jnp.float32)
    zeros_x = jnp.zeros((EMBED,), jnp.float32)
    prev_h = prev_c = None
    first = True
    for level in constituency_tree:
        nh, nc = [], []
        for node in level:
            if first:
                x = emb[node[0]]
                h_l = h_r = c_l = c_r = zeros_h
            elif len(node) == 1:
                x = emb[node[0]]
                h_l, c_l = prev_h[node[0]], prev_c[node[0]]
                h_r = c_r = zeros_h
            else:
                x = zeros_x
                h_l, c_l = prev_h[node[0]], prev_c[node[0]]
                h_r, c_r = prev_h[node[1]], prev_c[node[1]]
            i = jax.nn.sigmoid(lin('w_i', x) + lin('u_i_l', h_l) + lin('u_i_r', h_r))
            f_l = jax.nn.sigmoid(lin('w_f', x) + lin('u_f_ll', h_l) + lin('u_f_lr', h_r))
            f_r = jax.nn.sigmoid(lin('w_f', x) + lin('u_f_rl', h_r) + lin('u_f_rr', h_l))
            o = jax.nn.sigmoid(lin('w_o', x) + lin('u_o_l', h_l) + lin('u_o_r', h_r))
            u = jnp.tanh(lin('w_u', x) + lin('u_u_l', h_l) + lin('u_u_r', h_r))
            c = i * u + f_l * c_l + f_r * c_r
            h = o * jnp.tanh(c)
            nh.append(h)
            nc.append(c)
        prev_h, prev_c = nh, nc
        first = False
    w, b = raw['linear']
    return jax.nn.sigmoid(prev_h[0] @ w.T + b)


# ---------------------------------------------------------------------------
if __name__ == "__main__":
    key = jax.random.PRNGKey(0)
    raw, fused = init_params(key)

    # Small balanced constituency tree over a length-8 sequence, plus one
    # single-child node to exercise the len(node)==1 branch.
    constituency_tree = [
        [[0], [1], [2], [3], [4], [5], [6], [7]],   # leaves
        [[0, 1], [2, 3], [4, 5], [6]],              # includes a unary node
        [[0, 1], [2, 3]],
        [[0, 1]],                                   # root
    ]
    input_seq = jnp.asarray([3, 7, 11, 15, 19, 23, 27, 31], jnp.int32)

    forward = make_forward(constituency_tree)
    out = jax.block_until_ready(forward(input_seq, fused))

    ref = jax.block_until_ready(reference_forward(constituency_tree, input_seq, raw))

    assert out.shape == (1,)
    assert jnp.allclose(out, ref, atol=1e-5, rtol=1e-5), (out, ref)
    print("KERNEL_OK")
</pallas_src>

<mosaic_0001>
module attributes {stable_mosaic.version = 11 : i64} {
  func.func @kernel(%arg0: memref<4x8x32xf32, #tpu.memory_space<vmem>>, %arg1: memref<96x160xf32, #tpu.memory_space<vmem>>, %arg2: memref<1x160xf32, #tpu.memory_space<vmem>>, %arg3: memref<1x32xf32, #tpu.memory_space<vmem>>, %arg4: memref<1x1xf32, #tpu.memory_space<vmem>>, %arg5: memref<1x1xf32, #tpu.memory_space<vmem>>, %arg6: memref<8x96xf32, #tpu.memory_space<vmem>>) attributes {dimension_semantics = [], scalar_prefetch = 0 : i64, scratch_operands = 1 : i64, tpu.core_type = #tpu.core_type<tc>} {
    %c0 = arith.constant 0 : index
    %c0_0 = arith.constant 0 : index
    %0 = vector.load %arg1[%c0, %c0_0] : memref<96x160xf32, #tpu.memory_space<vmem>>, vector<96x160xf32>
    %c0_1 = arith.constant 0 : index
    %c0_2 = arith.constant 0 : index
    %1 = vector.load %arg2[%c0_1, %c0_2] : memref<1x160xf32, #tpu.memory_space<vmem>>, vector<1x160xf32>
    %cst = arith.constant 0.000000e+00 : f32
    %2 = vector.broadcast %cst : f32 to vector<8x32xf32>
    %cst_3 = arith.constant 0.000000e+00 : f32
    %3 = vector.broadcast %cst_3 : f32 to vector<8x32xf32>
    %cst_4 = arith.constant 0.000000e+00 : f32
    %4 = vector.broadcast %cst_4 : f32 to vector<8x32xf32>
    %cst_5 = arith.constant 0.000000e+00 : f32
    %5 = vector.broadcast %cst_5 : f32 to vector<8x32xf32>
    %c0_6 = arith.constant 0 : index
    %c0_7 = arith.constant 0 : index
    %c0_8 = arith.constant 0 : index
    %6 = vector.load %arg0[%c0_6, %c0_7, %c0_8] : memref<4x8x32xf32, #tpu.memory_space<vmem>>, vector<1x8x32xf32>
    %7 = vector.shape_cast %6 : vector<1x8x32xf32> to vector<8x32xf32>
    %c0_9 = arith.constant 0 : index
    %c0_10 = arith.constant 0 : index
    %8 = vector.load %arg6[%c0_9, %c0_10] : memref<8x96xf32, #tpu.memory_space<vmem>>, vector<8x32xf32>
    tpu.vector_store %arg6[%c0_9, %c0_10], %7 {strides = array<i32>} : memref<8x96xf32, #tpu.memory_space<vmem>>, vector<8x32xf32>,
    %c0_11 = arith.constant 0 : index
    %c32 = arith.constant 32 : index
    %9 = vector.load %arg6[%c0_11, %c32] : memref<8x96xf32, #tpu.memory_space<vmem>>, vector<8x32xf32>
    tpu.vector_store %arg6[%c0_11, %c32], %2 {strides = array<i32>} : memref<8x96xf32, #tpu.memory_space<vmem>>, vector<8x32xf32>,
    %c0_12 = arith.constant 0 : index
    %c64 = arith.constant 64 : index
    %10 = vector.load %arg6[%c0_12, %c64] : memref<8x96xf32, #tpu.memory_space<vmem>>, vector<8x32xf32>
    tpu.vector_store %arg6[%c0_12, %c64], %4 {strides = array<i32>} : memref<8x96xf32, #tpu.memory_space<vmem>>, vector<8x32xf32>,
    %c0_13 = arith.constant 0 : index
    %c0_14 = arith.constant 0 : index
    %11 = vector.load %arg6[%c0_13, %c0_14] : memref<8x96xf32, #tpu.memory_space<vmem>>, vector<8x96xf32>
    %cst_15 = arith.constant dense<0.000000e+00> : vector<8x160xf32>
    %12 = tpu.matmul %11, %0, %cst_15 {dimension_numbers = #tpu.dot_dimension_numbers<[1], [0], [0], [1], [0, 0, 1, 1], [], []>} : vector<8x96xf32>, vector<96x160xf32>, vector<8x160xf32> -> vector<8x160xf32>
    %13 = vector.broadcast %1 : vector<1x160xf32> to vector<8x160xf32>
    %14 = arith.addf %12, %13 : vector<8x160xf32>
    %15 = vector.extract_strided_slice %14 {offsets = [0, 0], sizes = [8, 32], strides = [1, 1]} : vector<8x160xf32> to vector<8x32xf32>
    %16 = arith.negf %15 : vector<8x32xf32>
    %17 = math.exp %16 : vector<8x32xf32>
    %cst_16 = arith.constant 1.000000e+00 : f32
    %18 = vector.broadcast %cst_16 : f32 to vector<8x32xf32>
    %19 = arith.addf %18, %17 : vector<8x32xf32>
    %20 = arith.divf %18, %19 : vector<8x32xf32>
    %21 = vector.extract_strided_slice %14 {offsets = [0, 32], sizes = [8, 32], strides = [1, 1]} : vector<8x160xf32> to vector<8x32xf32>
    %22 = arith.negf %21 : vector<8x32xf32>
    %23 = math.exp %22 : vector<8x32xf32>
    %cst_17 = arith.constant 1.000000e+00 : f32
    %24 = vector.broadcast %cst_17 : f32 to vector<8x32xf32>
    %25 = arith.addf %24, %23 : vector<8x32xf32>
    %26 = arith.divf %24, %25 : vector<8x32xf32>
    %27 = vector.extract_strided_slice %14 {offsets = [0, 64], sizes = [8, 32], strides = [1, 1]} : vector<8x160xf32> to vector<8x32xf32>
    %28 = arith.negf %27 : vector<8x32xf32>
    %29 = math.exp %28 : vector<8x32xf32>
    %cst_18 = arith.constant 1.000000e+00 : f32
    %30 = vector.broadcast %cst_18 : f32 to vector<8x32xf32>
    %31 = arith.addf %30, %29 : vector<8x32xf32>
    %32 = arith.divf %30, %31 : vector<8x32xf32>
    %33 = vector.extract_strided_slice %14 {offsets = [0, 96], sizes = [8, 32], strides = [1, 1]} : vector<8x160xf32> to vector<8x32xf32>
    %34 = arith.negf %33 : vector<8x32xf32>
    %35 = math.exp %34 : vector<8x32xf32>
    %cst_19 = arith.constant 1.000000e+00 : f32
    %36 = vector.broadcast %cst_19 : f32 to vector<8x32xf32>
    %37 = arith.addf %36, %35 : vector<8x32xf32>
    %38 = arith.divf %36, %37 : vector<8x32xf32>
    %39 = vector.extract_strided_slice %14 {offsets = [0, 128], sizes = [8, 32], strides = [1, 1]} : vector<8x160xf32> to vector<8x32xf32>
    %40 = math.tanh %39 : vector<8x32xf32>
    %41 = arith.mulf %20, %40 : vector<8x32xf32>
    %42 = arith.mulf %26, %3 : vector<8x32xf32>
    %43 = arith.addf %41, %42 : vector<8x32xf32>
    %44 = arith.mulf %32, %5 : vector<8x32xf32>
    %45 = arith.addf %43, %44 : vector<8x32xf32>
    %46 = math.tanh %45 : vector<8x32xf32>
    %47 = arith.mulf %38, %46 : vector<8x32xf32>
    %48 = vector.extract_strided_slice %47 {offsets = [0, 0], sizes = [1, 32], strides = [1, 1]} : vector<8x32xf32> to vector<1x32xf32>
    %49 = vector.extract_strided_slice %47 {offsets = [2, 0], sizes = [1, 32], strides = [1, 1]} : vector<8x32xf32> to vector<1x32xf32>
    %50 = vector.extract_strided_slice %47 {offsets = [4, 0], sizes = [1, 32], strides = [1, 1]} : vector<8x32xf32> to vector<1x32xf32>
    %51 = vector.extract_strided_slice %47 {offsets = [6, 0], sizes = [1, 32], strides = [1, 1]} : vector<8x32xf32> to vector<1x32xf32>
    %cst_20 = arith.constant 0.000000e+00 : f32
    %52 = vector.broadcast %cst_20 : f32 to vector<1x32xf32>
    %cst_21 = arith.constant 0.000000e+00 : f32
    %53 = vector.broadcast %cst_21 : f32 to vector<1x32xf32>
    %cst_22 = arith.constant 0.000000e+00 : f32
    %54 = vector.broadcast %cst_22 : f32 to vector<1x32xf32>
    %cst_23 = arith.constant 0.000000e+00 : f32
    %55 = vector.broadcast %cst_23 : f32 to vector<1x32xf32>
    %56 = tpu.concatenate %48, %49, %50, %51, %52, %53, %54, %55 in 0 : vector<1x32xf32>, vector<1x32xf32>, vector<1x32xf32>, vector<1x32xf32>, vector<1x32xf32>, vector<1x32xf32>, vector<1x32xf32>, vector<1x32xf32> -> vector<8x32xf32>
    %57 = vector.extract_strided_slice %45 {offsets = [0, 0], sizes = [1, 32], strides = [1, 1]} : vector<8x32xf32> to vector<1x32xf32>
    %58 = vector.extract_strided_slice %45 {offsets = [2, 0], sizes = [1, 32], strides = [1, 1]} : vector<8x32xf32> to vector<1x32xf32>
    %59 = vector.extract_strided_slice %45 {offsets = [4, 0], sizes = [1, 32], strides = [1, 1]} : vector<8x32xf32> to vector<1x32xf32>
    %60 = vector.extract_strided_slice %45 {offsets = [6, 0], sizes = [1, 32], strides = [1, 1]} : vector<8x32xf32> to vector<1x32xf32>
    %cst_24 = arith.constant 0.000000e+00 : f32
    %61 = vector.broadcast %cst_24 : f32 to vector<1x32xf32>
    %cst_25 = arith.constant 0.000000e+00 : f32
    %62 = vector.broadcast %cst_25 : f32 to vector<1x32xf32>
    %cst_26 = arith.constant 0.000000e+00 : f32
    %63 = vector.broadcast %cst_26 : f32 to vector<1x32xf32>
    %cst_27 = arith.constant 0.000000e+00 : f32
    %64 = vector.broadcast %cst_27 : f32 to vector<1x32xf32>
    %65 = tpu.concatenate %57, %58, %59, %60, %61, %62, %63, %64 in 0 : vector<1x32xf32>, vector<1x32xf32>, vector<1x32xf32>, vector<1x32xf32>, vector<1x32xf32>, vector<1x32xf32>, vector<1x32xf32>, vector<1x32xf32> -> vector<8x32xf32>
    %66 = vector.extract_strided_slice %47 {offsets = [1, 0], sizes = [1, 32], strides = [1, 1]} : vector<8x32xf32> to vector<1x32xf32>
    %67 = vector.extract_strided_slice %47 {offsets = [3, 0], sizes = [1, 32], strides = [1, 1]} : vector<8x32xf32> to vector<1x32xf32>
    %68 = vector.extract_strided_slice %47 {offsets = [5, 0], sizes = [1, 32], strides = [1, 1]} : vector<8x32xf32> to vector<1x32xf32>
    %cst_28 = arith.constant 0.000000e+00 : f32
    %69 = vector.broadcast %cst_28 : f32 to vector<1x32xf32>
    %cst_29 = arith.constant 0.000000e+00 : f32
    %70 = vector.broadcast %cst_29 : f32 to vector<1x32xf32>
    %cst_30 = arith.constant 0.000000e+00 : f32
    %71 = vector.broadcast %cst_30 : f32 to vector<1x32xf32>
    %cst_31 = arith.constant 0.000000e+00 : f32
    %72 = vector.broadcast %cst_31 : f32 to vector<1x32xf32>
    %cst_32 = arith.constant 0.000000e+00 : f32
    %73 = vector.broadcast %cst_32 : f32 to vector<1x32xf32>
    %74 = tpu.concatenate %66, %67, %68, %69, %70, %71, %72, %73 in 0 : vector<1x32xf32>, vector<1x32xf32>, vector<1x32xf32>, vector<1x32xf32>, vector<1x32xf32>, vector<1x32xf32>, vector<1x32xf32>, vector<1x32xf32> -> vector<8x32xf32>
    %75 = vector.extract_strided_slice %45 {offsets = [1, 0], sizes = [1, 32], strides = [1, 1]} : vector<8x32xf32> to vector<1x32xf32>
    %76 = vector.extract_strided_slice %45 {offsets = [3, 0], sizes = [1, 32], strides = [1, 1]} : vector<8x32xf32> to vector<1x32xf32>
    %77 = vector.extract_strided_slice %45 {offsets = [5, 0], sizes = [1, 32], strides = [1, 1]} : vector<8x32xf32> to vector<1x32xf32>
    %cst_33 = arith.constant 0.000000e+00 : f32
    %78 = vector.broadcast %cst_33 : f32 to vector<1x32xf32>
    %cst_34 = arith.constant 0.000000e+00 : f32
    %79 = vector.broadcast %cst_34 : f32 to vector<1x32xf32>
    %cst_35 = arith.constant 0.000000e+00 : f32
    %80 = vector.broadcast %cst_35 : f32 to vector<1x32xf32>
    %cst_36 = arith.constant 0.000000e+00 : f32
    %81 = vector.broadcast %cst_36 : f32 to vector<1x32xf32>
    %cst_37 = arith.constant 0.000000e+00 : f32
    %82 = vector.broadcast %cst_37 : f32 to vector<1x32xf32>
    %83 = tpu.concatenate %75, %76, %77, %78, %79, %80, %81, %82 in 0 : vector<1x32xf32>, vector<1x32xf32>, vector<1x32xf32>, vector<1x32xf32>, vector<1x32xf32>, vector<1x32xf32>, vector<1x32xf32>, vector<1x32xf32> -> vector<8x32xf32>
    %c1 = arith.constant 1 : index
    %c0_38 = arith.constant 0 : index
    %c0_39 = arith.constant 0 : index
    %84 = vector.load %arg0[%c1, %c0_38, %c0_39] : memref<4x8x32xf32, #tpu.memory_space<vmem>>, vector<1x8x32xf32>
    %85 = vector.shape_cast %84 : vector<1x8x32xf32> to vector<8x32xf32>
    %c0_40 = arith.constant 0 : index
    %c0_41 = arith.constant 0 : index
    %86 = vector.load %arg6[%c0_40, %c0_41] : memref<8x96xf32, #tpu.memory_space<vmem>>, vector<8x32xf32>
    tpu.vector_store %arg6[%c0_40, %c0_41], %85 {strides = array<i32>} : memref<8x96xf32, #tpu.memory_space<vmem>>, vector<8x32xf32>,
    %c0_42 = arith.constant 0 : index
    %c32_43 = arith.constant 32 : index
    %87 = vector.load %arg6[%c0_42, %c32_43] : memref<8x96xf32, #tpu.memory_space<vmem>>, vector<8x32xf32>
    tpu.vector_store %arg6[%c0_42, %c32_43], %56 {strides = array<i32>} : memref<8x96xf32, #tpu.memory_space<vmem>>, vector<8x32xf32>,
    %c0_44 = arith.constant 0 : index
    %c64_45 = arith.constant 64 : index
    %88 = vector.load %arg6[%c0_44, %c64_45] : memref<8x96xf32, #tpu.memory_space<vmem>>, vector<8x32xf32>
    tpu.vector_store %arg6[%c0_44, %c64_45], %74 {strides = array<i32>} : memref<8x96xf32, #tpu.memory_space<vmem>>, vector<8x32xf32>,
    %c0_46 = arith.constant 0 : index
    %c0_47 = arith.constant 0 : index
    %89 = vector.load %arg6[%c0_46, %c0_47] : memref<8x96xf32, #tpu.memory_space<vmem>>, vector<8x96xf32>
    %cst_48 = arith.constant dense<0.000000e+00> : vector<8x160xf32>
    %90 = tpu.matmul %89, %0, %cst_48 {dimension_numbers = #tpu.dot_dimension_numbers<[1], [0], [0], [1], [0, 0, 1, 1], [], []>} : vector<8x96xf32>, vector<96x160xf32>, vector<8x160xf32> -> vector<8x160xf32>
    %91 = vector.broadcast %1 : vector<1x160xf32> to vector<8x160xf32>
    %92 = arith.addf %90, %91 : vector<8x160xf32>
    %93 = vector.extract_strided_slice %92 {offsets = [0, 0], sizes = [8, 32], strides = [1, 1]} : vector<8x160xf32> to vector<8x32xf32>
    %94 = arith.negf %93 : vector<8x32xf32>
    %95 = math.exp %94 : vector<8x32xf32>
    %cst_49 = arith.constant 1.000000e+00 : f32
    %96 = vector.broadcast %cst_49 : f32 to vector<8x32xf32>
    %97 = arith.addf %96, %95 : vector<8x32xf32>
    %98 = arith.divf %96, %97 : vector<8x32xf32>
    %99 = vector.extract_strided_slice %92 {offsets = [0, 32], sizes = [8, 32], strides = [1, 1]} : vector<8x160xf32> to vector<8x32xf32>
    %100 = arith.negf %99 : vector<8x32xf32>
    %101 = math.exp %100 : vector<8x32xf32>
    %cst_50 = arith.constant 1.000000e+00 : f32
    %102 = vector.broadcast %cst_50 : f32 to vector<8x32xf32>
    %103 = arith.addf %102, %101 : vector<8x32xf32>
    %104 = arith.divf %102, %103 : vector<8x32xf32>
    %105 = vector.extract_strided_slice %92 {offsets = [0, 64], sizes = [8, 32], strides = [1, 1]} : vector<8x160xf32> to vector<8x32xf32>
    %106 = arith.negf %105 : vector<8x32xf32>
    %107 = math.exp %106 : vector<8x32xf32>
    %cst_51 = arith.constant 1.000000e+00 : f32
    %108 = vector.broadcast %cst_51 : f32 to vector<8x32xf32>
    %109 = arith.addf %108, %107 : vector<8x32xf32>
    %110 = arith.divf %108, %109 : vector<8x32xf32>
    %111 = vector.extract_strided_slice %92 {offsets = [0, 96], sizes = [8, 32], strides = [1, 1]} : vector<8x160xf32> to vector<8x32xf32>
    %112 = arith.negf %111 : vector<8x32xf32>
    %113 = math.exp %112 : vector<8x32xf32>
    %cst_52 = arith.constant 1.000000e+00 : f32
    %114 = vector.broadcast %cst_52 : f32 to vector<8x32xf32>
    %115 = arith.addf %114, %113 : vector<8x32xf32>
    %116 = arith.divf %114, %115 : vector<8x32xf32>
    %117 = vector.extract_strided_slice %92 {offsets = [0, 128], sizes = [8, 32], strides = [1, 1]} : vector<8x160xf32> to vector<8x32xf32>
    %118 = math.tanh %117 : vector<8x32xf32>
    %119 = arith.mulf %98, %118 : vector<8x32xf32>
    %120 = arith.mulf %104, %65 : vector<8x32xf32>
    %121 = arith.addf %119, %120 : vector<8x32xf32>
    %122 = arith.mulf %110, %83 : vector<8x32xf32>
    %123 = arith.addf %121, %122 : vector<8x32xf32>
    %124 = math.tanh %123 : vector<8x32xf32>
    %125 = arith.mulf %116, %124 : vector<8x32xf32>
    %126 = vector.extract_strided_slice %125 {offsets = [0, 0], sizes = [1, 32], strides = [1, 1]} : vector<8x32xf32> to vector<1x32xf32>
    %127 = vector.extract_strided_slice %125 {offsets = [2, 0], sizes = [1, 32], strides = [1, 1]} : vector<8x32xf32> to vector<1x32xf32>
    %cst_53 = arith.constant 0.000000e+00 : f32
    %128 = vector.broadcast %cst_53 : f32 to vector<1x32xf32>
    %cst_54 = arith.constant 0.000000e+00 : f32
    %129 = vector.broadcast %cst_54 : f32 to vector<1x32xf32>
    %cst_55 = arith.constant 0.000000e+00 : f32
    %130 = vector.broadcast %cst_55 : f32 to vector<1x32xf32>
    %cst_56 = arith.constant 0.000000e+00 : f32
    %131 = vector.broadcast %cst_56 : f32 to vector<1x32xf32>
    %cst_57 = arith.constant 0.000000e+00 : f32
    %132 = vector.broadcast %cst_57 : f32 to vector<1x32xf32>
    %cst_58 = arith.constant 0.000000e+00 : f32
    %133 = vector.broadcast %cst_58 : f32 to vector<1x32xf32>
    %134 = tpu.concatenate %126, %127, %128, %129, %130, %131, %132, %133 in 0 : vector<1x32xf32>, vector<1x32xf32>, vector<1x32xf32>, vector<1x32xf32>, vector<1x32xf32>, vector<1x32xf32>, vector<1x32xf32>, vector<1x32xf32> -> vector<8x32xf32>
    %135 = vector.extract_strided_slice %123 {offsets = [0, 0], sizes = [1, 32], strides = [1, 1]} : vector<8x32xf32> to vector<1x32xf32>
    %136 = vector.extract_strided_slice %123 {offsets = [2, 0], sizes = [1, 32], strides = [1, 1]} : vector<8x32xf32> to vector<1x32xf32>
    %cst_59 = arith.constant 0.000000e+00 : f32
    %137 = vector.broadcast %cst_59 : f32 to vector<1x32xf32>
    %cst_60 = arith.constant 0.000000e+00 : f32
    %138 = vector.broadcast %cst_60 : f32 to vector<1x32xf32>
    %cst_61 = arith.constant 0.000000e+00 : f32
    %139 = vector.broadcast %cst_61 : f32 to vector<1x32xf32>
    %cst_62 = arith.constant 0.000000e+00 : f32
    %140 = vector.broadcast %cst_62 : f32 to vector<1x32xf32>
    %cst_63 = arith.constant 0.000000e+00 : f32
    %141 = vector.broadcast %cst_63 : f32 to vector<1x32xf32>
    %cst_64 = arith.constant 0.000000e+00 : f32
    %142 = vector.broadcast %cst_64 : f32 to vector<1x32xf32>
    %143 = tpu.concatenate %135, %136, %137, %138, %139, %140, %141, %142 in 0 : vector<1x32xf32>, vector<1x32xf32>, vector<1x32xf32>, vector<1x32xf32>, vector<1x32xf32>, vector<1x32xf32>, vector<1x32xf32>, vector<1x32xf32> -> vector<8x32xf32>
    %144 = vector.extract_strided_slice %125 {offsets = [1, 0], sizes = [1, 32], strides = [1, 1]} : vector<8x32xf32> to vector<1x32xf32>
    %145 = vector.extract_strided_slice %125 {offsets = [3, 0], sizes = [1, 32], strides = [1, 1]} : vector<8x32xf32> to vector<1x32xf32>
    %cst_65 = arith.constant 0.000000e+00 : f32
    %146 = vector.broadcast %cst_65 : f32 to vector<1x32xf32>
    %cst_66 = arith.constant 0.000000e+00 : f32
    %147 = vector.broadcast %cst_66 : f32 to vector<1x32xf32>
    %cst_67 = arith.constant 0.000000e+00 : f32
    %148 = vector.broadcast %cst_67 : f32 to vector<1x32xf32>
    %cst_68 = arith.constant 0.000000e+00 : f32
    %149 = vector.broadcast %cst_68 : f32 to vector<1x32xf32>
    %cst_69 = arith.constant 0.000000e+00 : f32
    %150 = vector.broadcast %cst_69 : f32 to vector<1x32xf32>
    %cst_70 = arith.constant 0.000000e+00 : f32
    %151 = vector.broadcast %cst_70 : f32 to vector<1x32xf32>
    %152 = tpu.concatenate %144, %145, %146, %147, %148, %149, %150, %151 in 0 : vector<1x32xf32>, vector<1x32xf32>, vector<1x32xf32>, vector<1x32xf32>, vector<1x32xf32>, vector<1x32xf32>, vector<1x32xf32>, vector<1x32xf32> -> vector<8x32xf32>
    %153 = vector.extract_strided_slice %123 {offsets = [1, 0], sizes = [1, 32], strides = [1, 1]} : vector<8x32xf32> to vector<1x32xf32>
    %154 = vector.extract_strided_slice %123 {offsets = [3, 0], sizes = [1, 32], strides = [1, 1]} : vector<8x32xf32> to vector<1x32xf32>
    %cst_71 = arith.constant 0.000000e+00 : f32
    %155 = vector.broadcast %cst_71 : f32 to vector<1x32xf32>
    %cst_72 = arith.constant 0.000000e+00 : f32
    %156 = vector.broadcast %cst_72 : f32 to vector<1x32xf32>
    %cst_73 = arith.constant 0.000000e+00 : f32
    %157 = vector.broadcast %cst_73 : f32 to vector<1x32xf32>
    %cst_74 = arith.constant 0.000000e+00 : f32
    %158 = vector.broadcast %cst_74 : f32 to vector<1x32xf32>
    %cst_75 = arith.constant 0.000000e+00 : f32
    %159 = vector.broadcast %cst_75 : f32 to vector<1x32xf32>
    %cst_76 = arith.constant 0.000000e+00 : f32
    %160 = vector.broadcast %cst_76 : f32 to vector<1x32xf32>
    %161 = tpu.concatenate %153, %154, %155, %156, %157, %158, %159, %160 in 0 : vector<1x32xf32>, vector<1x32xf32>, vector<1x32xf32>, vector<1x32xf32>, vector<1x32xf32>, vector<1x32xf32>, vector<1x32xf32>, vector<1x32xf32> -> vector<8x32xf32>
    %c2 = arith.constant 2 : index
    %c0_77 = arith.constant 0 : index
    %c0_78 = arith.constant 0 : index
    %162 = vector.load %arg0[%c2, %c0_77, %c0_78] : memref<4x8x32xf32, #tpu.memory_space<vmem>>, vector<1x8x32xf32>
    %163 = vector.shape_cast %162 : vector<1x8x32xf32> to vector<8x32xf32>
    %c0_79 = arith.constant 0 : index
    %c0_80 = arith.constant 0 : index
    %164 = vector.load %arg6[%c0_79, %c0_80] : memref<8x96xf32, #tpu.memory_space<vmem>>, vector<8x32xf32>
    tpu.vector_store %arg6[%c0_79, %c0_80], %163 {strides = array<i32>} : memref<8x96xf32, #tpu.memory_space<vmem>>, vector<8x32xf32>,
    %c0_81 = arith.constant 0 : index
    %c32_82 = arith.constant 32 : index
    %165 = vector.load %arg6[%c0_81, %c32_82] : memref<8x96xf32, #tpu.memory_space<vmem>>, vector<8x32xf32>
    tpu.vector_store %arg6[%c0_81, %c32_82], %134 {strides = array<i32>} : memref<8x96xf32, #tpu.memory_space<vmem>>, vector<8x32xf32>,
    %c0_83 = arith.constant 0 : index
    %c64_84 = arith.constant 64 : index
    %166 = vector.load %arg6[%c0_83, %c64_84] : memref<8x96xf32, #tpu.memory_space<vmem>>, vector<8x32xf32>
    tpu.vector_store %arg6[%c0_83, %c64_84], %152 {strides = array<i32>} : memref<8x96xf32, #tpu.memory_space<vmem>>, vector<8x32xf32>,
    %c0_85 = arith.constant 0 : index
    %c0_86 = arith.constant 0 : index
    %167 = vector.load %arg6[%c0_85, %c0_86] : memref<8x96xf32, #tpu.memory_space<vmem>>, vector<8x96xf32>
    %cst_87 = arith.constant dense<0.000000e+00> : vector<8x160xf32>
    %168 = tpu.matmul %167, %0, %cst_87 {dimension_numbers = #tpu.dot_dimension_numbers<[1], [0], [0], [1], [0, 0, 1, 1], [], []>} : vector<8x96xf32>, vector<96x160xf32>, vector<8x160xf32> -> vector<8x160xf32>
    %169 = vector.broadcast %1 : vector<1x160xf32> to vector<8x160xf32>
    %170 = arith.addf %168, %169 : vector<8x160xf32>
    %171 = vector.extract_strided_slice %170 {offsets = [0, 0], sizes = [8, 32], strides = [1, 1]} : vector<8x160xf32> to vector<8x32xf32>
    %172 = arith.negf %171 : vector<8x32xf32>
    %173 = math.exp %172 : vector<8x32xf32>
    %cst_88 = arith.constant 1.000000e+00 : f32
    %174 = vector.broadcast %cst_88 : f32 to vector<8x32xf32>
    %175 = arith.addf %174, %173 : vector<8x32xf32>
    %176 = arith.divf %174, %175 : vector<8x32xf32>
    %177 = vector.extract_strided_slice %170 {offsets = [0, 32], sizes = [8, 32], strides = [1, 1]} : vector<8x160xf32> to vector<8x32xf32>
    %178 = arith.negf %177 : vector<8x32xf32>
    %179 = math.exp %178 : vector<8x32xf32>
    %cst_89 = arith.constant 1.000000e+00 : f32
    %180 = vector.broadcast %cst_89 : f32 to vector<8x32xf32>
    %181 = arith.addf %180, %179 : vector<8x32xf32>
    %182 = arith.divf %180, %181 : vector<8x32xf32>
    %183 = vector.extract_strided_slice %170 {offsets = [0, 64], sizes = [8, 32], strides = [1, 1]} : vector<8x160xf32> to vector<8x32xf32>
    %184 = arith.negf %183 : vector<8x32xf32>
    %185 = math.exp %184 : vector<8x32xf32>
    %cst_90 = arith.constant 1.000000e+00 : f32
    %186 = vector.broadcast %cst_90 : f32 to vector<8x32xf32>
    %187 = arith.addf %186, %185 : vector<8x32xf32>
    %188 = arith.divf %186, %187 : vector<8x32xf32>
    %189 = vector.extract_strided_slice %170 {offsets = [0, 96], sizes = [8, 32], strides = [1, 1]} : vector<8x160xf32> to vector<8x32xf32>
    %190 = arith.negf %189 : vector<8x32xf32>
    %191 = math.exp %190 : vector<8x32xf32>
    %cst_91 = arith.constant 1.000000e+00 : f32
    %192 = vector.broadcast %cst_91 : f32 to vector<8x32xf32>
    %193 = arith.addf %192, %191 : vector<8x32xf32>
    %194 = arith.divf %192, %193 : vector<8x32xf32>
    %195 = vector.extract_strided_slice %170 {offsets = [0, 128], sizes = [8, 32], strides = [1, 1]} : vector<8x160xf32> to vector<8x32xf32>
    %196 = math.tanh %195 : vector<8x32xf32>
    %197 = arith.mulf %176, %196 : vector<8x32xf32>
    %198 = arith.mulf %182, %143 : vector<8x32xf32>
    %199 = arith.addf %197, %198 : vector<8x32xf32>
    %200 = arith.mulf %188, %161 : vector<8x32xf32>
    %201 = arith.addf %199, %200 : vector<8x32xf32>
    %202 = math.tanh %201 : vector<8x32xf32>
    %203 = arith.mulf %194, %202 : vector<8x32xf32>
    %204 = vector.extract_strided_slice %203 {offsets = [0, 0], sizes = [1, 32], strides = [1, 1]} : vector<8x32xf32> to vector<1x32xf32>
    %cst_92 = arith.constant 0.000000e+00 : f32
    %205 = vector.broadcast %cst_92 : f32 to vector<1x32xf32>
    %cst_93 = arith.constant 0.000000e+00 : f32
    %206 = vector.broadcast %cst_93 : f32 to vector<1x32xf32>
    %cst_94 = arith.constant 0.000000e+00 : f32
    %207 = vector.broadcast %cst_94 : f32 to vector<1x32xf32>
    %cst_95 = arith.constant 0.000000e+00 : f32
    %208 = vector.broadcast %cst_95 : f32 to vector<1x32xf32>
    %cst_96 = arith.constant 0.000000e+00 : f32
    %209 = vector.broadcast %cst_96 : f32 to vector<1x32xf32>
    %cst_97 = arith.constant 0.000000e+00 : f32
    %210 = vector.broadcast %cst_97 : f32 to vector<1x32xf32>
    %cst_98 = arith.constant 0.000000e+00 : f32
    %211 = vector.broadcast %cst_98 : f32 to vector<1x32xf32>
    %212 = tpu.concatenate %204, %205, %206, %207, %208, %209, %210, %211 in 0 : vector<1x32xf32>, vector<1x32xf32>, vector<1x32xf32>, vector<1x32xf32>, vector<1x32xf32>, vector<1x32xf32>, vector<1x32xf32>, vector<1x32xf32> -> vector<8x32xf32>
    %213 = vector.extract_strided_slice %201 {offsets = [0, 0], sizes = [1, 32], strides = [1, 1]} : vector<8x32xf32> to vector<1x32xf32>
    %cst_99 = arith.constant 0.000000e+00 : f32
    %214 = vector.broadcast %cst_99 : f32 to vector<1x32xf32>
    %cst_100 = arith.constant 0.000000e+00 : f32
    %215 = vector.broadcast %cst_100 : f32 to vector<1x32xf32>
    %cst_101 = arith.constant 0.000000e+00 : f32
    %216 = vector.broadcast %cst_101 : f32 to vector<1x32xf32>
    %cst_102 = arith.constant 0.000000e+00 : f32
    %217 = vector.broadcast %cst_102 : f32 to vector<1x32xf32>
    %cst_103 = arith.constant 0.000000e+00 : f32
    %218 = vector.broadcast %cst_103 : f32 to vector<1x32xf32>
    %cst_104 = arith.constant 0.000000e+00 : f32
    %219 = vector.broadcast %cst_104 : f32 to vector<1x32xf32>
    %cst_105 = arith.constant 0.000000e+00 : f32
    %220 = vector.broadcast %cst_105 : f32 to vector<1x32xf32>
    %221 = tpu.concatenate %213, %214, %215, %216, %217, %218, %219, %220 in 0 : vector<1x32xf32>, vector<1x32xf32>, vector<1x32xf32>, vector<1x32xf32>, vector<1x32xf32>, vector<1x32xf32>, vector<1x32xf32>, vector<1x32xf32> -> vector<8x32xf32>
    %222 = vector.extract_strided_slice %203 {offsets = [1, 0], sizes = [1, 32], strides = [1, 1]} : vector<8x32xf32> to vector<1x32xf32>
    %cst_106 = arith.constant 0.000000e+00 : f32
    %223 = vector.broadcast %cst_106 : f32 to vector<1x32xf32>
    %cst_107 = arith.constant 0.000000e+00 : f32
    %224 = vector.broadcast %cst_107 : f32 to vector<1x32xf32>
    %cst_108 = arith.constant 0.000000e+00 : f32
    %225 = vector.broadcast %cst_108 : f32 to vector<1x32xf32>
    %cst_109 = arith.constant 0.000000e+00 : f32
    %226 = vector.broadcast %cst_109 : f32 to vector<1x32xf32>
    %cst_110 = arith.constant 0.000000e+00 : f32
    %227 = vector.broadcast %cst_110 : f32 to vector<1x32xf32>
    %cst_111 = arith.constant 0.000000e+00 : f32
    %228 = vector.broadcast %cst_111 : f32 to vector<1x32xf32>
    %cst_112 = arith.constant 0.000000e+00 : f32
    %229 = vector.broadcast %cst_112 : f32 to vector<1x32xf32>
    %230 = tpu.concatenate %222, %223, %224, %225, %226, %227, %228, %229 in 0 : vector<1x32xf32>, vector<1x32xf32>, vector<1x32xf32>, vector<1x32xf32>, vector<1x32xf32>, vector<1x32xf32>, vector<1x32xf32>, vector<1x32xf32> -> vector<8x32xf32>
    %231 = vector.extract_strided_slice %201 {offsets = [1, 0], sizes = [1, 32], strides = [1, 1]} : vector<8x32xf32> to vector<1x32xf32>
    %cst_113 = arith.constant 0.000000e+00 : f32
    %232 = vector.broadcast %cst_113 : f32 to vector<1x32xf32>
    %cst_114 = arith.constant 0.000000e+00 : f32
    %233 = vector.broadcast %cst_114 : f32 to vector<1x32xf32>
    %cst_115 = arith.constant 0.000000e+00 : f32
    %234 = vector.broadcast %cst_115 : f32 to vector<1x32xf32>
    %cst_116 = arith.constant 0.000000e+00 : f32
    %235 = vector.broadcast %cst_116 : f32 to vector<1x32xf32>
    %cst_117 = arith.constant 0.000000e+00 : f32
    %236 = vector.broadcast %cst_117 : f32 to vector<1x32xf32>
    %cst_118 = arith.constant 0.000000e+00 : f32
    %237 = vector.broadcast %cst_118 : f32 to vector<1x32xf32>
    %cst_119 = arith.constant 0.000000e+00 : f32
    %238 = vector.broadcast %cst_119 : f32 to vector<1x32xf32>
    %239 = tpu.concatenate %231, %232, %233, %234, %235, %236, %237, %238 in 0 : vector<1x32xf32>, vector<1x32xf32>, vector<1x32xf32>, vector<1x32xf32>, vector<1x32xf32>, vector<1x32xf32>, vector<1x32xf32>, vector<1x32xf32> -> vector<8x32xf32>
    %c3 = arith.constant 3 : index
    %c0_120 = arith.constant 0 : index
    %c0_121 = arith.constant 0 : index
    %240 = vector.load %arg0[%c3, %c0_120, %c0_121] : memref<4x8x32xf32, #tpu.memory_space<vmem>>, vector<1x8x32xf32>
    %241 = vector.shape_cast %240 : vector<1x8x32xf32> to vector<8x32xf32>
    %c0_122 = arith.constant 0 : index
    %c0_123 = arith.constant 0 : index
    %242 = vector.load %arg6[%c0_122, %c0_123] : memref<8x96xf32, #tpu.memory_space<vmem>>, vector<8x32xf32>
    tpu.vector_store %arg6[%c0_122, %c0_123], %241 {strides = array<i32>} : memref<8x96xf32, #tpu.memory_space<vmem>>, vector<8x32xf32>,
    %c0_124 = arith.constant 0 : index
    %c32_125 = arith.constant 32 : index
    %243 = vector.load %arg6[%c0_124, %c32_125] : memref<8x96xf32, #tpu.memory_space<vmem>>, vector<8x32xf32>
    tpu.vector_store %arg6[%c0_124, %c32_125], %212 {strides = array<i32>} : memref<8x96xf32, #tpu.memory_space<vmem>>, vector<8x32xf32>,
    %c0_126 = arith.constant 0 : index
    %c64_127 = arith.constant 64 : index
    %244 = vector.load %arg6[%c0_126, %c64_127] : memref<8x96xf32, #tpu.memory_space<vmem>>, vector<8x32xf32>
    tpu.vector_store %arg6[%c0_126, %c64_127], %230 {strides = array<i32>} : memref<8x96xf32, #tpu.memory_space<vmem>>, vector<8x32xf32>,
    %c0_128 = arith.constant 0 : index
    %c0_129 = arith.constant 0 : index
    %245 = vector.load %arg6[%c0_128, %c0_129] : memref<8x96xf32, #tpu.memory_space<vmem>>, vector<8x96xf32>
    %cst_130 = arith.constant dense<0.000000e+00> : vector<8x160xf32>
    %246 = tpu.matmul %245, %0, %cst_130 {dimension_numbers = #tpu.dot_dimension_numbers<[1], [0], [0], [1], [0, 0, 1, 1], [], []>} : vector<8x96xf32>, vector<96x160xf32>, vector<8x160xf32> -> vector<8x160xf32>
    %247 = vector.broadcast %1 : vector<1x160xf32> to vector<8x160xf32>
    %248 = arith.addf %246, %247 : vector<8x160xf32>
    %249 = vector.extract_strided_slice %248 {offsets = [0, 0], sizes = [8, 32], strides = [1, 1]} : vector<8x160xf32> to vector<8x32xf32>
    %250 = arith.negf %249 : vector<8x32xf32>
    %251 = math.exp %250 : vector<8x32xf32>
    %cst_131 = arith.constant 1.000000e+00 : f32
    %252 = vector.broadcast %cst_131 : f32 to vector<8x32xf32>
    %253 = arith.addf %252, %251 : vector<8x32xf32>
    %254 = arith.divf %252, %253 : vector<8x32xf32>
    %255 = vector.extract_strided_slice %248 {offsets = [0, 32], sizes = [8, 32], strides = [1, 1]} : vector<8x160xf32> to vector<8x32xf32>
    %256 = arith.negf %255 : vector<8x32xf32>
    %257 = math.exp %256 : vector<8x32xf32>
    %cst_132 = arith.constant 1.000000e+00 : f32
    %258 = vector.broadcast %cst_132 : f32 to vector<8x32xf32>
    %259 = arith.addf %258, %257 : vector<8x32xf32>
    %260 = arith.divf %258, %259 : vector<8x32xf32>
    %261 = vector.extract_strided_slice %248 {offsets = [0, 64], sizes = [8, 32], strides = [1, 1]} : vector<8x160xf32> to vector<8x32xf32>
    %262 = arith.negf %261 : vector<8x32xf32>
    %263 = math.exp %262 : vector<8x32xf32>
    %cst_133 = arith.constant 1.000000e+00 : f32
    %264 = vector.broadcast %cst_133 : f32 to vector<8x32xf32>
    %265 = arith.addf %264, %263 : vector<8x32xf32>
    %266 = arith.divf %264, %265 : vector<8x32xf32>
    %267 = vector.extract_strided_slice %248 {offsets = [0, 96], sizes = [8, 32], strides = [1, 1]} : vector<8x160xf32> to vector<8x32xf32>
    %268 = arith.negf %267 : vector<8x32xf32>
    %269 = math.exp %268 : vector<8x32xf32>
    %cst_134 = arith.constant 1.000000e+00 : f32
    %270 = vector.broadcast %cst_134 : f32 to vector<8x32xf32>
    %271 = arith.addf %270, %269 : vector<8x32xf32>
    %272 = arith.divf %270, %271 : vector<8x32xf32>
    %273 = vector.extract_strided_slice %248 {offsets = [0, 128], sizes = [8, 32], strides = [1, 1]} : vector<8x160xf32> to vector<8x32xf32>
    %274 = math.tanh %273 : vector<8x32xf32>
    %275 = arith.mulf %254, %274 : vector<8x32xf32>
    %276 = arith.mulf %260, %221 : vector<8x32xf32>
    %277 = arith.addf %275, %276 : vector<8x32xf32>
    %278 = arith.mulf %266, %239 : vector<8x32xf32>
    %279 = arith.addf %277, %278 : vector<8x32xf32>
    %280 = math.tanh %279 : vector<8x32xf32>
    %281 = arith.mulf %272, %280 : vector<8x32xf32>
    %282 = vector.extract_strided_slice %281 {offsets = [0, 0], sizes = [1, 32], strides = [1, 1]} : vector<8x32xf32> to vector<1x32xf32>
    %c0_135 = arith.constant 0 : index
    %c0_136 = arith.constant 0 : index
    %283 = vector.load %arg3[%c0_135, %c0_136] : memref<1x32xf32, #tpu.memory_space<vmem>>, vector<1x32xf32>
    %284 = arith.mulf %282, %283 : vector<1x32xf32>
    %cst_137 = arith.constant dense<0.000000e+00> : vector<1xf32>
    %285 = vector.multi_reduction <add>, %284, %cst_137 [1] : vector<1x32xf32> to vector<1xf32>
    %286 = vector.shape_cast %285 : vector<1xf32> to vector<1x1xf32>
    %c0_138 = arith.constant 0 : index
    %c0_139 = arith.constant 0 : index
    %287 = vector.load %arg4[%c0_138, %c0_139] : memref<1x1xf32, #tpu.memory_space<vmem>>, vector<1x1xf32>
    %288 = arith.addf %286, %287 : vector<1x1xf32>
    %289 = arith.negf %288 : vector<1x1xf32>
    %290 = math.exp %289 : vector<1x1xf32>
    %cst_140 = arith.constant 1.000000e+00 : f32
    %291 = vector.broadcast %cst_140 : f32 to vector<1x1xf32>
    %292 = arith.addf %291, %290 : vector<1x1xf32>
    %293 = arith.divf %291, %292 : vector<1x1xf32>
    %c0_141 = arith.constant 0 : index
    %c0_142 = arith.constant 0 : index
    %294 = vector.load %arg5[%c0_141, %c0_142] : memref<1x1xf32, #tpu.memory_space<vmem>>, vector<1x1xf32>
    tpu.vector_store %arg5[%c0_141, %c0_142], %293 {strides = array<i32>} : memref<1x1xf32, #tpu.memory_space<vmem>>, vector<1x1xf32>,
    return
  }
}

</mosaic_0001>

<bundles_post_ra>
// kernel: forward.1
= control target key start
LH: loop header
LB: loop body
LE: loop exit
PB: predicated region body
PF: predicated region fallthrough
CT: control target
= control target key end

     0   :  { %s1225_s0 = inlined_call_operand.vmem [shape: f32[4,8,32], index: 0, kind: input, shape index: {}]   ;;  %s1226_s1 = inlined_call_operand.vmem [shape: f32[96,160], index: 1, kind: input, shape index: {}]   ;;  %s1227_s2 = inlined_call_operand.vmem [shape: f32[1,160], index: 2, kind: input, shape index: {}]   ;;  %s1228_s3 = inlined_call_operand.vmem [shape: f32[1,32], index: 3, kind: input, shape index: {}]   ;;  %s1229_s4 = inlined_call_operand.<no memory space> [shape: f32[1,1], index: 4, kind: input, shape index: {}]   ;;  %s1230_s5 = inlined_call_operand.hbm [shape: f32[1,1], index: 5, kind: output, shape index: {}]  }
   0x1   :  { %v10_v0 = vstv %s1229_s4 }
   0x2   :  { %11 = vst [vmem:[#allocation3] sm:$0x1] %v10_v0 }
   0x3   :  { %v24_v1 = vld [vmem:[%s1226_s1 + $0x8] sm:$0xff]  ;;  %v26_v2 = vld [vmem:[%s1226_s1 + $0x18] sm:$0xff]  ;;  %v23_v3 = vld [vmem:[%s1226_s1] sm:$0xff]  ;;  %v869_v8 = vmov 0.0   ;;  %vm49_vm0 = vcmask 261120   ;;  %vm51_vm1 = vcmask 523520  }
   0x4   :  { %v916_v4 = vpack.c.bf16 %v26_v2, %v24_v1  ;;  %v25_v5 = vld [vmem:[%s1226_s1 + $0x10] sm:$0xff]  ;;  %v28_v6 = vld [vmem:[%s1226_s1 + $0x28] sm:$0xff]  ;;  %v30_v7 = vld [vmem:[%s1226_s1 + $0x38] sm:$0xff]  ;;  %135 = vmatprep.mubr.f32.mxu0 %v869_v8  ;;  %296 = vmatprep.mubr.f32.mxu1 %v869_v8  ;;  %vm53_vm2 = vcmask 785920  }
   0x5   :  { %v929_v9 = vpack.c.bf16 %v25_v5, %v23_v3  ;;  %v931_v10 = vpack.c.bf16 %v30_v7, %v28_v6  ;;  %v27_v11 = vld [vmem:[%s1226_s1 + $0x20] sm:$0xff]  ;;  %v29_v12 = vld [vmem:[%s1226_s1 + $0x30] sm:$0xff]  ;;  %v32_v13 = vld [vmem:[%s1226_s1 + $0x48] sm:$0xff] }
   0x6   :  { %709 = vmatprep.subr.bf16.mxu0 %v916_v4  ;;  %v34_v14 = vld [vmem:[%s1226_s1 + $0x58] sm:$0xff]  ;;  %733 = vmatprep.subr.bf16.mxu1 %v916_v4  ;;  %v948_v15 = vpack.c.bf16 %v29_v12, %v27_v11  ;;  %v31_v17 = vld [vmem:[%s1226_s1 + $0x40] sm:$0xff]  ;;  %v33_v18 = vld [vmem:[%s1226_s1 + $0x50] sm:$0xff] }
   0x7   :  { %711 = vmatpush1.bf16.msra.mxu0 %v929_v9  ;;  %735 = vmatpush1.bf16.msra.mxu1 %v929_v9  ;;  %v952_v16 = vpack.c.bf16 %v34_v14, %v32_v13  ;;  %v36_v19 = vld [vmem:[%s1226_s1 + $0x68] sm:$0xff]  ;;  %v38_v20 = vld [vmem:[%s1226_s1 + $0x78] sm:$0xff]  ;;  %v968_v21 = vpack.c.bf16 %v33_v18, %v31_v17  ;;  %v48_v22 = vld [vmem:[%s1225_s0] sm:$0xff] }
   0x8   :  { %713 = vmatprep.subr.bf16.mxu0 %v931_v10  ;;  %737 = vmatprep.subr.bf16.mxu1 %v931_v10 }
   0xb   :  { %715 = vmatpush1.bf16.msra.mxu0 %v948_v15  ;;  %739 = vmatpush1.bf16.msra.mxu1 %v948_v15 }
   0xc   :  { %12 = vsyncpa [#allocation5], 0  ;;  %717 = vmatprep.subr.bf16.mxu0 %v952_v16  ;;  %v975_v23 = vpack.c.bf16 %v38_v20, %v36_v19  ;;  %v35_v24 = vld [vmem:[%s1226_s1 + $0x60] sm:$0xff]  ;;  %v37_v25 = vld [vmem:[%s1226_s1 + $0x70] sm:$0xff]  ;;  %50 = vst.msk [vmem:[#allocation2] sm:$0xff] %vm49_vm0, %v48_v22  ;;  %741 = vmatprep.subr.bf16.mxu1 %v952_v16  ;;  %vm67_vm3 = vcmask 785408   ;;  %v57_v40 = vlaneseq }
   0xd   :  { %v40_v26 = vld [vmem:[%s1226_s1 + $0x88] sm:$0xff]  ;;  %v42_v27 = vld [vmem:[%s1226_s1 + $0x98] sm:$0xff]  ;;  %52 = vst.msk [vmem:[#allocation2] sm:$0xff] %vm51_vm1, %v869_v8  ;;  %v996_v28 = vpack.c.bf16 %v37_v25, %v35_v24  ;;  %v39_v30 = vld [vmem:[%s1226_s1 + $0x80] sm:$0xff]  ;;  %s870_s19 = smov 96   ;;  %s871_s20 = smov 64  }
   0xe   :  { %54 = vst.msk [vmem:[#allocation2] sm:$0xff] %vm53_vm2, %v869_v8  ;;  %v1000_v29 = vpack.c.bf16 %v42_v27, %v40_v26  ;;  %v41_v31 = vld [vmem:[%s1226_s1 + $0x90] sm:$0xff]  ;;  %v44_v32 = vld [vmem:[%s1226_s1 + $0xa8] sm:$0xff]  ;;  %v46_v33 = vld [vmem:[%s1226_s1 + $0xb8] sm:$0xff]  ;;  %v58_v41 = vshrl.u32 %v57_v40, 7  ;;  %vm173_vm4 = vcmask 1040384  }
   0xf   :  { %719 = vmatpush1.bf16.msra.mxu0 %v968_v21  ;;  %743 = vmatpush1.bf16.msra.mxu1 %v968_v21  ;;  %v1016_v34 = vpack.c.bf16 %v41_v31, %v39_v30  ;;  %v1020_v35 = vpack.c.bf16 %v46_v33, %v44_v32  ;;  %v43_v36 = vld [vmem:[%s1226_s1 + $0xa0] sm:$0xff]  ;;  %v45_v37 = vld [vmem:[%s1226_s1 + $0xb0] sm:$0xff]  ;;  %vm175_vm5 = vcmask 1041408   ;;  %vm177_vm6 = vcmask 1042432   ;;  %s872_s22 = smov 32  }
  0x10   :  { %721 = vmatprep.subr.bf16.mxu0 %v975_v23  ;;  %745 = vmatprep.subr.bf16.mxu1 %v975_v23  ;;  %v1030_v38 = vpack.c.bf16 %v45_v37, %v43_v36  ;;  %v59_v42 = vsub.s32 0, %v58_v41  ;;  %v47_v43 = vld [vmem:[%s1227_s2] sm:$0x3]  ;;  %v63_v53 = vsub.s32 1, %v58_v41  ;;  %vm179_vm7 = vcmask 1043456  }
  0x11   :  { %vm181_vm8 = vcmask 1044480   ;;  %vm183_vm9 = vcmask 1045504   ;;  %vm185_vm10 = vcmask 1046528   ;;  %vm667_vm11 = vcmask 253952  }
  0x12   :  { %v1055_v44 = vrot.slane %v47_v43, %v59_v42  ;;  %v1060_v54 = vrot.slane %v47_v43, %v63_v53  ;;  %vm679_vm12 = vcmask 0  }
  0x13   :  { %723 = vmatpush1.bf16.msra.mxu0 %v996_v28  ;;  %747 = vmatpush1.bf16.msra.mxu1 %v996_v28 }
  0x14   :  { %725 = vmatprep.subr.bf16.mxu0 %v1000_v29  ;;  %749 = vmatprep.subr.bf16.mxu1 %v1000_v29 }
  0x15   :  { %v55_v39 = vld [vmem:[#allocation2] sm:$0xff] }
  0x17   :  { %727 = vmatpush1.bf16.msra.mxu0 %v1016_v34  ;;  %751 = vmatpush1.bf16.msra.mxu1 %v1016_v34 }
  0x18   :  { %729 = vmatprep.subr.bf16.mxu0 %v1020_v35  ;;  %753 = vmatprep.subr.bf16.mxu1 %v1020_v35 }
  0x1b   :  { %731 = vmatpush1.bf16.msra.mxu0 %v1030_v38  ;;  %755 = vmatpush1.bf16.msra.mxu1 %v1030_v38 }
  0x1c   :  { %757 = vmatprep.subr.bf16.mxu0 %v916_v4  ;;  %781 = vmatprep.subr.bf16.mxu1 %v916_v4  ;;  %v697_v4 = vld [vmem:[%s1225_s0 + $0x8] sm:$0xff] }
  0x1d   :  { %217 = vst.msk [vmem:[#allocation2] sm:$0xff] %vm49_vm0, %v697_v4 }
  0x1e   :  { %695 = vmatmul.mubr.msk.f32.vlgmr.msra.gmra.mrb[0].mxu0 %vm67_vm3, %v55_v39 }
  0x1f   :  { %759 = vmatpush1.bf16.msra.mxu0 %v929_v9  ;;  %456 = vmatprep.mubr.f32.mxu0 %v869_v8 }
  0x20   :  { %761 = vmatprep.subr.bf16.mxu0 %v931_v10 }
  0x23   :  { %763 = vmatpush1.bf16.msra.mxu0 %v948_v15 }
  0x24   :  { %765 = vmatprep.subr.bf16.mxu0 %v952_v16 }
  0x27   :  { %767 = vmatpush1.bf16.msra.mxu0 %v968_v21 }
  0x28   :  { %769 = vmatprep.subr.bf16.mxu0 %v975_v23 }
  0x2b   :  { %771 = vmatpush1.bf16.msra.mxu0 %v996_v28 }
  0x2c   :  { %773 = vmatprep.subr.bf16.mxu0 %v1000_v29 }
  0x2f   :  { %775 = vmatpush1.bf16.msra.mxu0 %v1016_v34 }
  0x30   :  { %777 = vmatprep.subr.bf16.mxu0 %v1020_v35 }
  0x33   :  { %779 = vmatpush1.bf16.msra.mxu0 %v1030_v38 }
  0xf1   :  { %v137_v45 = vpop.f32.mrb[0].mxu0 }
  0xf2   :  { %v138_v46 = vadd.f32 %v137_v45, %v1055_v44  ;;  %v139_v47 = vpop.f32.mrb[1].mxu0 }
  0xf3   :  { %v140_v55 = vadd.f32 %v139_v47, %v1060_v54 }
  0xf4   :  { %v696_v48 = vmul.f32 -1.442695, %v138_v46 }
  0xf6   :  { %809 = vpow2.f32 %v696_v48 }
 0x100   :  { %v810_v49 = vpop.eup %809 }
 0x101   :  { %v145_v50 = vadd.f32 1.0, %v810_v49 }
 0x103   :  { %811 = vrcp.f32 %v145_v50 }
 0x104   :  { %813 = vtanh.f32 %v140_v55 }
 0x10d   :  { %v812_v51 = vpop.eup %811 }
 0x10e   :  { %v150_v52 = vmul.f32 0.0, %v812_v51  ;;  %v814_v56 = vpop.eup %813 }
 0x10f   :  { %v149_v58 = vmul.f32 %v814_v56, %v812_v51 }
 0x110   :  { %152 = vrot.lane.b32.xlu0 %v150_v52, %s870_s19 }
 0x114   :  { %156 = vrot.lane.b32.xlu0 %v150_v52, %s871_s20 }
 0x182   :  { %v153_v57 = vpop.permute.xlu0 %152 }
 0x183   :  { %v155_v59 = vadd.f32 %v153_v57, %v149_v58 }
 0x186   :  { %v157_v60 = vpop.permute.xlu0 %156 }
 0x187   :  { %v159_v61 = vadd.f32 %v157_v60, %v155_v59 }
 0x189   :  { %815 = vtanh.f32 %v159_v61  ;;  %v188_v63 = vrot.slane %v159_v61, 1  ;;  %v190_v0 = vrot.slane %v159_v61, 2  ;;  %v192_v1 = vrot.slane %v159_v61, 3 }
 0x18b   :  { %v208_v2 = vsel %vm173_vm4, %v188_v63, %v190_v0  ;;  %v194_v3 = vsel %vm173_vm4, %v159_v61, %v188_v63 }
 0x18c   :  { %v209_v5 = vsel %vm175_vm5, %v208_v2, %v192_v1  ;;  %v195_v7 = vsel %vm175_vm5, %v194_v3, %v190_v0  ;;  %v700_v0 = vld [vmem:[%s1225_s0 + $0x10] sm:$0xff] }
 0x18d   :  { %v210_v12 = vsel %vm177_vm6, %v209_v5, 0.0  ;;  %v196_v18 = vsel %vm177_vm6, %v195_v7, %v192_v1 }
 0x18e   :  { %v211_v25 = vsel %vm179_vm7, %v210_v12, 0.0  ;;  %v197_v26 = vsel %vm179_vm7, %v196_v18, 0.0 }
 0x18f   :  { %v212_v37 = vsel %vm181_vm8, %v211_v25, 0.0  ;;  %v198_v39 = vsel %vm181_vm8, %v197_v26, 0.0 }
 0x190   :  { %v213_v45 = vsel %vm183_vm9, %v212_v37, 0.0  ;;  %v199_v46 = vsel %vm183_vm9, %v198_v39, 0.0 }
 0x191   :  { %v214_v47 = vsel %vm185_vm10, %v213_v45, 0.0  ;;  %v200_v48 = vsel %vm185_vm10, %v199_v46, 0.0 }
 0x193   :  { %v816_v62 = vpop.eup %815 }
 0x194   :  { %162 = vrot.lane.b32.xlu1 %v816_v62, %s870_s19 }
 0x206   :  { %v163_v6 = vpop.permute.xlu1 %162 }
 0x207   :  { %v165_v11 = vmul.f32 %v812_v51, %v163_v6 }
 0x209   :  { %v167_v13 = vrot.slane %v165_v11, 1  ;;  %v169_v14 = vrot.slane %v165_v11, 2  ;;  %v171_v17 = vrot.slane %v165_v11, 3 }
 0x20b   :  { %v174_v19 = vsel %vm173_vm4, %v165_v11, %v167_v13  ;;  %v201_v20 = vsel %vm173_vm4, %v167_v13, %v169_v14 }
 0x20c   :  { %v202_v22 = vsel %vm175_vm5, %v201_v20, %v171_v17  ;;  %v176_v24 = vsel %vm175_vm5, %v174_v19, %v169_v14 }
 0x20d   :  { %v203_v27 = vsel %vm177_vm6, %v202_v22, 0.0  ;;  %v178_v30 = vsel %vm177_vm6, %v176_v24, %v171_v17 }
 0x20e   :  { %v204_v31 = vsel %vm179_vm7, %v203_v27, 0.0  ;;  %v180_v32 = vsel %vm179_vm7, %v178_v30, 0.0 }
 0x20f   :  { %v205_v33 = vsel %vm181_vm8, %v204_v31, 0.0  ;;  %v182_v36 = vsel %vm181_vm8, %v180_v32, 0.0 }
 0x210   :  { %v206_v40 = vsel %vm183_vm9, %v205_v33, 0.0  ;;  %v184_v41 = vsel %vm183_vm9, %v182_v36, 0.0 }
 0x211   :  { %v207_v42 = vsel %vm185_vm10, %v206_v40, 0.0  ;;  %v186_v43 = vsel %vm185_vm10, %v184_v41, 0.0 }
 0x212   :  { %224 = vrot.lane.b32.xlu0 %v207_v42, %s870_s19  ;;  %219 = vrot.lane.b32.xlu1 %v186_v43, %s871_s20 }
 0x216   :  { %322 = vrot.lane.b32.xlu0 %v214_v47, %s871_s20  ;;  %312 = vrot.lane.b32.xlu1 %v200_v48, %s872_s22 }
 0x284   :  { %v225_v49 = vpop.permute.xlu0 %224  ;;  %v220_v50 = vpop.permute.xlu1 %219 }
 0x285   :  { %222 = vst.msk [vmem:[#allocation2] sm:$0xff] %vm51_vm1, %v220_v50 }
 0x286   :  { %227 = vst.msk [vmem:[#allocation2] sm:$0xff] %vm53_vm2, %v225_v49 }
 0x288   :  { %v323_v52 = vpop.permute.xlu0 %322 }
 0x28d   :  { %v228_v51 = vld [vmem:[#allocation2] sm:$0xff] }
 0x28e   :  { %698 = vmatmul.mubr.msk.f32.vlgmr.msra.gmra.mrb[0].mxu1 %vm67_vm3, %v228_v51  ;;  %377 = vst.msk [vmem:[#allocation2] sm:$0xff] %vm49_vm0, %v700_v0 }
 0x28f   :  { %783 = vmatpush1.bf16.msra.mxu1 %v929_v9  ;;  %612 = vmatprep.mubr.f32.mxu1 %v869_v8 }
 0x290   :  { %785 = vmatprep.subr.bf16.mxu1 %v931_v10 }
 0x293   :  { %787 = vmatpush1.bf16.msra.mxu1 %v948_v15 }
 0x294   :  { %789 = vmatprep.subr.bf16.mxu1 %v952_v16 }
 0x297   :  { %791 = vmatpush1.bf16.msra.mxu1 %v968_v21 }
 0x298   :  { %793 = vmatprep.subr.bf16.mxu1 %v975_v23 }
 0x29b   :  { %795 = vmatpush1.bf16.msra.mxu1 %v996_v28  ;;  %v313_v28 = vpop.permute.xlu1 %312 }
 0x29c   :  { %797 = vmatprep.subr.bf16.mxu1 %v1000_v29 }
 0x29f   :  { %799 = vmatpush1.bf16.msra.mxu1 %v1016_v34 }
 0x2a0   :  { %801 = vmatprep.subr.bf16.mxu1 %v1020_v35 }
 0x2a3   :  { %803 = vmatpush1.bf16.msra.mxu1 %v1030_v38 }
 0x361   :  { %v298_v8 = vpop.f32.mrb[0].mxu1 }
 0x362   :  { %v299_v9 = vadd.f32 %v298_v8, %v1055_v44  ;;  %v300_v10 = vpop.f32.mrb[1].mxu1 }
 0x363   :  { %v301_v34 = vadd.f32 %v300_v10, %v1060_v54 }
 0x364   :  { %v699_v15 = vmul.f32 -1.442695, %v299_v9 }
 0x366   :  { %817 = vpow2.f32 %v699_v15 }
 0x370   :  { %v818_v16 = vpop.eup %817 }
 0x371   :  { %v306_v21 = vadd.f32 1.0, %v818_v16 }
 0x373   :  { %819 = vrcp.f32 %v306_v21 }
 0x374   :  { %821 = vtanh.f32 %v301_v34 }
 0x37d   :  { %v820_v23 = vpop.eup %819 }
 0x37e   :  { %v325_v53 = vmul.f32 %v820_v23, %v323_v52  ;;  %v315_v29 = vmul.f32 %v820_v23, %v313_v28  ;;  %v822_v35 = vpop.eup %821 }
 0x37f   :  { %v310_v38 = vmul.f32 %v822_v35, %v820_v23 }
 0x380   :  { %327 = vrot.lane.b32.xlu0 %v325_v53, %s871_s20  ;;  %317 = vrot.lane.b32.xlu1 %v315_v29, %s870_s19 }
 0x3f2   :  { %v318_v55 = vpop.permute.xlu1 %317  ;;  %v328_v57 = vpop.permute.xlu0 %327 }
 0x3f3   :  { %v320_v56 = vadd.f32 %v318_v55, %v310_v38  ;;  %v703_v55 = vld [vmem:[%s1225_s0 + $0x18] sm:$0xff] }
 0x3f5   :  { %v330_v58 = vadd.f32 %v328_v57, %v320_v56 }
 0x3f7   :  { %823 = vtanh.f32 %v330_v58  ;;  %v348_v60 = vrot.slane %v330_v58, 1  ;;  %v366_v61 = vrot.slane %v330_v58, 2 }
 0x3f9   :  { %v368_v62 = vsel %vm173_vm4, %v348_v60, %v366_v61  ;;  %v350_v63 = vsel %vm173_vm4, %v330_v58, %v348_v60 }
 0x3fa   :  { %v369_v2 = vsel %vm175_vm5, %v368_v62, 0.0  ;;  %v351_v3 = vsel %vm175_vm5, %v350_v63, 0.0 }
 0x3fb   :  { %v370_v7 = vsel %vm177_vm6, %v369_v2, 0.0  ;;  %v352_v11 = vsel %vm177_vm6, %v351_v3, 0.0 }
 0x3fc   :  { %v371_v18 = vsel %vm179_vm7, %v370_v7, 0.0  ;;  %v353_v19 = vsel %vm179_vm7, %v352_v11, 0.0 }
 0x3fd   :  { %v372_v30 = vsel %vm181_vm8, %v371_v18, 0.0  ;;  %v354_v31 = vsel %vm181_vm8, %v353_v19, 0.0 }
 0x3fe   :  { %v373_v39 = vsel %vm183_vm9, %v372_v30, 0.0  ;;  %v355_v40 = vsel %vm183_vm9, %v354_v31, 0.0 }
 0x3ff   :  { %v374_v41 = vsel %vm185_vm10, %v373_v39, 0.0  ;;  %v356_v42 = vsel %vm185_vm10, %v355_v40, 0.0 }
 0x401   :  { %v824_v59 = vpop.eup %823 }
 0x402   :  { %333 = vrot.lane.b32.xlu1 %v824_v59, %s870_s19 }
 0x474   :  { %v334_v1 = vpop.permute.xlu1 %333 }
 0x475   :  { %v336_v4 = vmul.f32 %v820_v23, %v334_v1 }
 0x477   :  { %v338_v5 = vrot.slane %v336_v4, 1  ;;  %v357_v6 = vrot.slane %v336_v4, 2 }
 0x479   :  { %v340_v12 = vsel %vm173_vm4, %v336_v4, %v338_v5  ;;  %v359_v13 = vsel %vm173_vm4, %v338_v5, %v357_v6 }
 0x47a   :  { %v341_v14 = vsel %vm175_vm5, %v340_v12, 0.0  ;;  %v360_v17 = vsel %vm175_vm5, %v359_v13, 0.0 }
 0x47b   :  { %v361_v20 = vsel %vm177_vm6, %v360_v17, 0.0  ;;  %v342_v22 = vsel %vm177_vm6, %v341_v14, 0.0 }
 0x47c   :  { %v362_v24 = vsel %vm179_vm7, %v361_v20, 0.0  ;;  %v343_v25 = vsel %vm179_vm7, %v342_v22, 0.0 }
 0x47d   :  { %v363_v26 = vsel %vm181_vm8, %v362_v24, 0.0  ;;  %v344_v27 = vsel %vm181_vm8, %v343_v25, 0.0 }
 0x47e   :  { %v364_v32 = vsel %vm183_vm9, %v363_v26, 0.0  ;;  %v345_v33 = vsel %vm183_vm9, %v344_v27, 0.0 }
 0x47f   :  { %v365_v36 = vsel %vm185_vm10, %v364_v32, 0.0  ;;  %v346_v37 = vsel %vm185_vm10, %v345_v33, 0.0 }
 0x480   :  { %384 = vrot.lane.b32.xlu1 %v365_v36, %s870_s19  ;;  %379 = vrot.lane.b32.xlu0 %v346_v37, %s871_s20 }
 0x484   :  { %482 = vrot.lane.b32.xlu1 %v374_v41, %s871_s20  ;;  %472 = vrot.lane.b32.xlu0 %v356_v42, %s872_s22 }
 0x4f2   :  { %v385_v43 = vpop.permute.xlu1 %384  ;;  %v380_v45 = vpop.permute.xlu0 %379 }
 0x4f3   :  { %382 = vst.msk [vmem:[#allocation2] sm:$0xff] %vm51_vm1, %v380_v45 }
 0x4f4   :  { %387 = vst.msk [vmem:[#allocation2] sm:$0xff] %vm53_vm2, %v385_v43 }
 0x4f6   :  { %v483_v10 = vpop.permute.xlu1 %482  ;;  %v473_v15 = vpop.permute.xlu0 %472 }
 0x4fb   :  { %v388_v46 = vld [vmem:[#allocation2] sm:$0xff] }
 0x4fc   :  { %701 = vmatmul.mubr.msk.f32.vlgmr.msra.gmra.mrb[2].mxu0 %vm67_vm3, %v388_v46  ;;  %533 = vst.msk [vmem:[#allocation2] sm:$0xff] %vm49_vm0, %v703_v55 }
 0x5cf   :  { %v458_v47 = vpop.f32.mrb[2].mxu0 }
 0x5d0   :  { %v459_v48 = vadd.f32 %v458_v47, %v1055_v44  ;;  %v460_v49 = vpop.f32.mrb[3].mxu0 }
 0x5d1   :  { %v461_v23 = vadd.f32 %v460_v49, %v1060_v54 }
 0x5d2   :  { %v702_v50 = vmul.f32 -1.442695, %v459_v48 }
 0x5d4   :  { %825 = vpow2.f32 %v702_v50 }
 0x5de   :  { %v826_v51 = vpop.eup %825 }
 0x5df   :  { %v466_v8 = vadd.f32 1.0, %v826_v51  ;;  %v706_v51 = vld [vmem:[%s1228_s3] ss:$0 sm:$0xff]  ;;  %s873_s3 = smov [#allocation4]  }
 0x5e0   :  { %s687_s4 = sshll.u32 %s873_s3, 4  ;;  %s688_s4 = int_to_ptr.vmem [resolvable:$true] %s687_s4 }
 0x5e1   :  { %827 = vrcp.f32 %v466_v8  ;;  %s845_s28 = scalar_lea.vmem %s688_s4, 16  ;;  %s849_s29 = scalar_lea.vmem %s688_s4, 32 }
 0x5e2   :  { %829 = vtanh.f32 %v461_v23  ;;  %p846_p0 = scmp.ne.s32.totalorder %s688_s4, %s845_s28  ;;  %p850_p1 = scmp.lt.s32.totalorder %s688_s4, %s688_s4 }
 0x5e3   :  { %p851_p2 = scmp.lt.s32.totalorder %s849_s29, %s845_s28 }
 0x5e5   :  { %p852_p3 = por %p851_p2, %p850_p1 }
 0x5e7   :  { %p853_p4 = pnand %p852_p3, %p846_p0 }
 0x5eb   :  { %v828_v9 = vpop.eup %827 }
 0x5ec   :  { %v485_v16 = vmul.f32 %v828_v9, %v483_v10  ;;  %v475_v21 = vmul.f32 %v828_v9, %v473_v15  ;;  %v830_v52 = vpop.eup %829 }
 0x5ed   :  { %v470_v28 = vmul.f32 %v830_v52, %v828_v9 }
 0x5ee   :  { %487 = vrot.lane.b32.xlu1 %v485_v16, %s871_s20  ;;  %477 = vrot.lane.b32.xlu0 %v475_v21, %s870_s19 }
 0x660   :  { %v478_v53 = vpop.permute.xlu0 %477  ;;  %v488_v34 = vpop.permute.xlu1 %487 }
 0x661   :  { %v480_v29 = vadd.f32 %v478_v53, %v470_v28 }
 0x663   :  { %v490_v35 = vadd.f32 %v488_v34, %v480_v29 }
 0x665   :  { %831 = vtanh.f32 %v490_v35  ;;  %v522_v56 = vrot.slane %v490_v35, 1  ;;  %v504_v57 = vsel %vm173_vm4, %v490_v35, 0.0  ;;  %v671_v35 = vld [vmem:[#allocation3] sm:$0x1] }
 0x666   :  { %v505_v59 = vsel %vm175_vm5, %v504_v57, 0.0 }
 0x667   :  { %v524_v58 = vsel %vm173_vm4, %v522_v56, 0.0  ;;  %v506_v63 = vsel %vm177_vm6, %v505_v59, 0.0 }
 0x668   :  { %v525_v61 = vsel %vm175_vm5, %v524_v58, 0.0  ;;  %v507_v4 = vsel %vm179_vm7, %v506_v63, 0.0 }
 0x669   :  { %v526_v2 = vsel %vm177_vm6, %v525_v61, 0.0  ;;  %v508_v17 = vsel %vm181_vm8, %v507_v4, 0.0 }
 0x66a   :  { %v527_v12 = vsel %vm179_vm7, %v526_v2, 0.0  ;;  %v509_v26 = vsel %vm183_vm9, %v508_v17, 0.0 }
 0x66b   :  { %v528_v24 = vsel %vm181_vm8, %v527_v12, 0.0  ;;  %v510_v31 = vsel %vm185_vm10, %v509_v26, 0.0 }
 0x66c   :  { %v529_v30 = vsel %vm183_vm9, %v528_v24, 0.0 }
 0x66d   :  { %v530_v32 = vsel %vm185_vm10, %v529_v30, 0.0 }
 0x66f   :  { %v832_v38 = vpop.eup %831 }
 0x670   :  { %493 = vrot.lane.b32.xlu0 %v832_v38, %s870_s19 }
 0x6e2   :  { %v494_v60 = vpop.permute.xlu0 %493 }
 0x6e3   :  { %v496_v62 = vmul.f32 %v828_v9, %v494_v60 }
 0x6e5   :  { %v497_v0 = vsel %vm173_vm4, %v496_v62, 0.0  ;;  %v512_v1 = vrot.slane %v496_v62, 1 }
 0x6e6   :  { %v498_v3 = vsel %vm175_vm5, %v497_v0, 0.0 }
 0x6e7   :  { %v499_v5 = vsel %vm177_vm6, %v498_v3, 0.0  ;;  %v514_v6 = vsel %vm173_vm4, %v512_v1, 0.0 }
 0x6e8   :  { %v515_v7 = vsel %vm175_vm5, %v514_v6, 0.0  ;;  %v500_v11 = vsel %vm179_vm7, %v499_v5, 0.0 }
 0x6e9   :  { %v501_v13 = vsel %vm181_vm8, %v500_v11, 0.0  ;;  %v516_v14 = vsel %vm177_vm6, %v515_v7, 0.0 }
 0x6ea   :  { %v502_v18 = vsel %vm183_vm9, %v501_v13, 0.0  ;;  %v517_v19 = vsel %vm179_vm7, %v516_v14, 0.0 }
 0x6eb   :  { %v503_v20 = vsel %vm185_vm10, %v502_v18, 0.0  ;;  %v518_v22 = vsel %vm181_vm8, %v517_v19, 0.0 }
 0x6ec   :  { %535 = vrot.lane.b32.xlu1 %v503_v20, %s871_s20  ;;  %v519_v25 = vsel %vm183_vm9, %v518_v22, 0.0 }
 0x6ed   :  { %v520_v27 = vsel %vm185_vm10, %v519_v25, 0.0 }
 0x6ee   :  { %540 = vrot.lane.b32.xlu0 %v520_v27, %s870_s19 }
 0x6f0   :  { %628 = vrot.lane.b32.xlu1 %v510_v31, %s872_s22 }
 0x6f2   :  { %638 = vrot.lane.b32.xlu0 %v530_v32, %s871_s20 }
 0x75e   :  { %v536_v33 = vpop.permute.xlu1 %535 }
 0x75f   :  { %538 = vst.msk [vmem:[#allocation2] sm:$0xff] %vm51_vm1, %v536_v33 }
 0x760   :  { %v541_v36 = vpop.permute.xlu0 %540 }
 0x761   :  { %543 = vst.msk [vmem:[#allocation2] sm:$0xff] %vm53_vm2, %v541_v36 }
 0x762   :  { %v629_v47 = vpop.permute.xlu1 %628 }
 0x764   :  { %v639_v48 = vpop.permute.xlu0 %638 }
 0x768   :  { %v544_v37 = vld [vmem:[#allocation2] sm:$0xff] }
 0x769   :  { %704 = vmatmul.mubr.msk.f32.vlgmr.msra.gmra.mrb[2].mxu1 %vm67_vm3, %v544_v37 }
 0x83c   :  { %v614_v39 = vpop.f32.mrb[2].mxu1 }
 0x83d   :  { %v615_v40 = vadd.f32 %v614_v39, %v1055_v44  ;;  %v616_v41 = vpop.f32.mrb[3].mxu1 }
 0x83e   :  { %v617_v44 = vadd.f32 %v616_v41, %v1060_v54 }
 0x83f   :  { %v705_v42 = vmul.f32 -1.442695, %v615_v40 }
 0x841   :  { %833 = vpow2.f32 %v705_v42 }
 0x84b   :  { %v834_v43 = vpop.eup %833 }
 0x84c   :  { %v622_v45 = vadd.f32 1.0, %v834_v43 }
 0x84e   :  { %835 = vrcp.f32 %v622_v45 }
 0x84f   :  { %837 = vtanh.f32 %v617_v44 }
 0x858   :  { %v836_v46 = vpop.eup %835 }
 0x859   :  { %v641_v49 = vmul.f32 %v836_v46, %v639_v48  ;;  %v631_v50 = vmul.f32 %v836_v46, %v629_v47  ;;  %v838_v8 = vpop.eup %837 }
 0x85a   :  { %v626_v9 = vmul.f32 %v838_v8, %v836_v46 }
 0x85b   :  { %643 = vrot.lane.b32.xlu0 %v641_v49, %s871_s20  ;;  %633 = vrot.lane.b32.xlu1 %v631_v50, %s870_s19 }
 0x85f   :  { %659 = vrot.lane.b32.xlu0 %v706_v51, %s870_s19 }
 0x8cd   :  { %v634_v10 = vpop.permute.xlu1 %633  ;;  %v644_v16 = vpop.permute.xlu0 %643 }
 0x8ce   :  { %v636_v15 = vadd.f32 %v634_v10, %v626_v9 }
 0x8d0   :  { %v646_v21 = vadd.f32 %v644_v16, %v636_v15 }
 0x8d1   :  { %v660_v28 = vpop.permute.xlu0 %659 }
 0x8d2   :  { %839 = vtanh.f32 %v646_v21 }
 0x8dc   :  { %v840_v23 = vpop.eup %839 }
 0x8dd   :  { %649 = vrot.lane.b32.xlu1 %v840_v23, %s870_s19 }
 0x94f   :  { %v650_v52 = vpop.permute.xlu1 %649 }
 0x950   :  { %v652_v53 = vmul.f32 %v836_v46, %v650_v52 }
 0x952   :  { %v662_v29 = vmul.f32 %v660_v28, %v652_v53 }
 0x954   :  { %664 = vrot.lane.b32.xlu1 %v662_v29, %s872_s22 }
 0x9c6   :  { %v665_v34 = vpop.permute.xlu1 %664 }
 0x9c7   :  { %v668_v54 = vsel %vm667_vm11, %v665_v34, 0.0 }
 0x9c8   :  { %669 = vadd.xlane.f32.xlu0 %v668_v54 }
 0xa55   :  { %v670_v38 = vpop.xlane.xlu0 %669 }
 0xa56   :  { %v672_v55 = vadd.f32 %v671_v35, %v670_v38 }
 0xa58   :  { %v707_v56 = vmul.f32 -1.442695, %v672_v55 }
 0xa5a   :  { %841 = vpow2.f32 %v707_v56 }
 0xa64   :  { %v842_v57 = vpop.eup %841 }
 0xa65   :  { %v676_v58 = vadd.f32 1.0, %v842_v57 }
 0xa67   :  { %843 = vrcp.f32 %v676_v58 }
 0xa71   :  { %v844_v59 = vpop.eup %843 }
 0xa72   :  { %680 = vst.msk [vmem:[#allocation4] sm:$0x1] %vm679_vm12, %v844_v59 }
 0xa73   :  { %856 = shalt.err (!%p853_p4)
}
 0xa74   :  { %s857_s7 = scalar_lea.hbm %s1230_s5, 16 }
 0xa75   :  { %p858_p5 = scmp.ne.s32.totalorder %s1230_s5, %s857_s7  ;;  %p861_p6 = scmp.lt.u32.totalorder %s857_s7, %s1230_s5 }
 0xa77   :  { %p863_p7 = pnand %p861_p6, %p858_p5 }
 0xa79   :  { %866 = shalt.err (!%p863_p7)
}
 0xa7a   :  { %690 = dma.vmem_to_hbm [thread:$0]  %s688_s4, 16, %s1230_s5, [#allocation5]  }
 0xa7b   :  { %867 = dma.done.wait [#allocation5], 16  }
 0xa7c   :  { %868 = vsyncadd [#allocation5], 4294967280 }
 0xa7d   :  { %694 = vsyncpa [#allocation5], 1 }

</bundles_post_ra>
